<compile_context>
chip_gen: v7x
topology: tpu7x:2x2x1
jax: 0.10.0
libtpu: 0.0.40
codegen_flags: <defaults>
</compile_context>

<pallas_src>
import functools

import jax
import jax.numpy as jnp
from jax.experimental import pallas as pl
from jax.experimental.pallas import tpu as pltpu


def _round_up(v, m):
    return ((v + m - 1) // m) * m


def _tpu_arch():
    """Return (per-core VMEM capacity in bytes, TPU generation int)."""
    vmem_cap = 128 << 20
    gen = 6
    try:
        info = pltpu.get_tpu_info()
        cap = getattr(info, "vmem_capacity_bytes", None)
        if cap:
            vmem_cap = int(cap)
    except Exception:
        pass
    try:
        kind = jax.devices()[0].device_kind.lower()
        for g in (7, 6, 5, 4):
            if f"v{g}" in kind:
                gen = g
                break
    except Exception:
        pass
    if gen >= 7:
        # v7x exposes 64 MiB per TensorCore.
        vmem_cap = min(vmem_cap, 64 << 20)
    return vmem_cap, gen


def _ffn_kernel(x_ref, w1_ref, b1_ref, w2_ref, b2_ref, o_ref, acc_ref, *,
                act_in_compute_dtype):
    # x_ref : (tm, Hp)       w1_ref: (Hp, tf)      b1_ref: (n_k, tf)  resident
    # w2_ref: (tf, Hp)       b2_ref: (1, Hp)       o_ref : (tm, Hp)
    # acc_ref: (tm, Hp) f32 scratch, resident across the F reduction axis.
    k = pl.program_id(1)

    # linear_1 on this F-slab (MXU, f32 accumulation).
    h = jnp.dot(x_ref[...], w1_ref[...], preferred_element_type=jnp.float32)

    b1_blk = b1_ref[pl.ds(k, 1), :]              # (1, tf) slice of resident bias
    if act_in_compute_dtype:
        # bf16 bias-add + ReLU (v6e/v7x): intermediate materializes once in
        # the MXU input dtype -> half the VMEM/vst traffic, no extra cast pass.
        h = jnp.maximum(h.astype(w2_ref.dtype) + b1_blk.astype(w2_ref.dtype), 0.0)
    else:
        h = jnp.maximum(h + b1_blk.astype(jnp.float32), 0.0).astype(w2_ref.dtype)
    # TODO(synk): dropout is identity (eval-mode semantics); training-mode
    # masking would use pltpu.prng_seed + pltpu.prng_random_bits + 1/(1-p).

    # linear_2 partial product for this F-slab, accumulated in f32.
    partial_out = jnp.dot(h, w2_ref[...], preferred_element_type=jnp.float32)

    @pl.when(k == 0)
    def _():
        acc_ref[...] = partial_out               # no zero-init + reload pass

    @pl.when(k > 0)
    def _():
        acc_ref[...] += partial_out

    @pl.when(k == pl.num_programs(1) - 1)
    def _():
        o_ref[...] = (acc_ref[...] + b2_ref[...].astype(jnp.float32)
                      ).astype(o_ref.dtype)


def prepare_ffn_params(w1, b1, w2, b2, *, compute_dtype=jnp.bfloat16,
                       tm=None, tf=None, vmem_budget_bytes=None,
                       vmem_limit_bytes=None):
    """Pad + cast the parameters ONCE and pick tiles under a gen-aware budget.

    w1: (H, F), b1: (F,)/(1,F), w2: (F, H), b2: (H,)/(1,H).
    """
    H, F = w1.shape
    assert w2.shape == (F, H)
    b1 = jnp.asarray(b1).reshape(1, F)
    b2 = jnp.asarray(b2).reshape(1, H)

    vmem_cap, gen = _tpu_arch()
    if compute_dtype is None:
        compute_dtype = w1.dtype
    itemsize = jnp.dtype(compute_dtype).itemsize

    # v5e has no bf16 VALU -> keep the bias+ReLU epilogue in f32 there.
    act_in_compute_dtype = (gen >= 6) and itemsize < 4

    # ---- generation-aware VMEM budget (headroom under physical) ------------
    frac = 0.80 if vmem_cap <= (64 << 20) else 0.85
    hard_cap = max(min(int(frac * vmem_cap), vmem_cap - (8 << 20)), 24 << 20)
    if vmem_budget_bytes is None:
        vmem_budget_bytes = int(0.9 * hard_cap)

    # ---- lane alignment: 256 fills the v6e/v7x 256x256 MXU, 128 fills v5e --
    lane_align = 256 if (gen >= 6 and H > 128) else 128
    Hp = _round_up(H, lane_align)
    tf_align = 256 if (gen >= 6 and F > 128) else 128

    # ---- tile caps ----------------------------------------------------------
    tm_align = max(8, 32 // itemsize)            # 8 f32 / 16 bf16 / 32 int8
    if tm is None:
        tm = 1024 if itemsize < 4 else 512       # big tm -> compute-bound streaming
    tm = max(tm_align, (tm // tm_align) * tm_align)
    if tf is None:
        # v7x: spend the scarce 64 MiB on tm, not tf.
        tf = (1024 if gen >= 7 else 2048) if itemsize < 4 else 1024
    tf = min(max(tf_align, (tf // tf_align) * tf_align), _round_up(F, tf_align))

    def vmem_bytes(tm_, tf_):
        dbl = 2                                   # double-buffered pipelined blocks
        pipelined = dbl * (tm_ * Hp               # x
                           + Hp * tf_             # w1 slab
                           + tf_ * Hp             # w2 slab
                           + tm_ * Hp)            # out
        resident = _round_up(pl.cdiv(F, tf_), 8) * tf_ + 8 * Hp   # b1 + b2 (f32)
        scratch = tm_ * Hp * 4                    # f32 accumulator
        interm = tm_ * tf_ * 4 + tm_ * tf_ * itemsize  # f32 h + compute-dtype copy
        return pipelined * itemsize + resident * 4 + scratch + interm

    # Shrink tf first (keeps arithmetic intensity ~ 2*tm/itemsize), then tm.
    while vmem_bytes(tm, tf) > vmem_budget_bytes and tf > tf_align:
        tf = max(tf_align, (tf // 2 // tf_align) * tf_align)
    while vmem_bytes(tm, tf) > vmem_budget_bytes and tm > tm_align:
        tm = max(tm_align, (tm // 2 // tm_align) * tm_align)

    if vmem_limit_bytes is None:
        vmem_limit_bytes = int(min(max(vmem_bytes(tm, tf) + (4 << 20), 16 << 20),
                                   hard_cap))

    # F padded to a multiple of tf so the reduction axis has no partial blocks
    # (zero pads are exact no-ops through ReLU + zero weight rows).
    Fp = _round_up(F, tf)
    n_k = Fp // tf

    # ---- pad + cast ONCE (off the per-call critical path) -------------------
    w1p = w1.astype(compute_dtype)
    w2p = w2.astype(compute_dtype)
    if Hp != H or Fp != F:
        w1p = jnp.pad(w1p, ((0, Hp - H), (0, Fp - F)))
        w2p = jnp.pad(w2p, ((0, Fp - F), (0, Hp - H)))
    b1p = b1.astype(jnp.float32)
    if Fp != F:
        b1p = jnp.pad(b1p, ((0, 0), (0, Fp - F)))
    b1p = b1p.reshape(n_k, tf)                   # resident block, sliced by k
    b2p = b2.astype(jnp.float32)
    if Hp != H:
        b2p = jnp.pad(b2p, ((0, 0), (0, Hp - H)))

    return dict(w1=w1p, b1=b1p, w2=w2p, b2=b2p, H=H, F=F, Hp=Hp, Fp=Fp,
                tf=tf, n_k=n_k, tm_max=tm, compute_dtype=compute_dtype,
                act_in_compute_dtype=act_in_compute_dtype,
                vmem_limit_bytes=vmem_limit_bytes, gen=gen)


def feed_forward_prepared(x, params):
    """x: (B, S, H) in any float dtype; returns (B, S, H) in x.dtype."""
    B, S, H = x.shape
    assert H == params["H"]
    M = B * S
    Hp, Fp, tf, n_k = params["Hp"], params["Fp"], params["tf"], params["n_k"]
    gen = params["gen"]
    compute_dtype = params["compute_dtype"]
    itemsize = jnp.dtype(compute_dtype).itemsize
    out_dtype = x.dtype

    tm_align = max(8, 32 // itemsize)
    tm = min(params["tm_max"], _round_up(M, tm_align))
    if gen >= 7 and M > tm_align:
        # >= 2 row tiles so the "parallel" axis feeds both v7x TensorCores.
        tm = min(tm, _round_up(pl.cdiv(M, 2), tm_align))
    tm = max(tm_align, tm)

    x2 = x.astype(compute_dtype).reshape(M, H)
    if Hp != H:
        x2 = jnp.pad(x2, ((0, 0), (0, Hp - H)))

    grid_m = pl.cdiv(M, tm)
    grid = (grid_m, n_k)

    cost = pl.CostEstimate(
        flops=2 * 2 * M * params["F"] * H,
        transcendentals=0,
        bytes_accessed=int(itemsize * 2 * M * Hp                     # x + out
                           + grid_m * itemsize * (Hp * Fp + Fp * Hp)  # re-streamed weights
                           + 4 * (n_k * tf + Hp)),                    # biases
    )

    kernel = functools.partial(
        _ffn_kernel, act_in_compute_dtype=params["act_in_compute_dtype"])

    out = pl.pallas_call(
        kernel,
        out_shape=jax.ShapeDtypeStruct((M, Hp), out_dtype),
        grid_spec=pltpu.PrefetchScalarGridSpec(
            num_scalar_prefetch=0,
            grid=grid,
            in_specs=[
                pl.BlockSpec((tm, Hp), lambda i, k: (i, 0)),    # x tile (reused over k)
                pl.BlockSpec((Hp, tf), lambda i, k: (0, k)),    # w1 slab (streamed)
                pl.BlockSpec((n_k, tf), lambda i, k: (0, 0)),   # b1 (fully resident)
                pl.BlockSpec((tf, Hp), lambda i, k: (k, 0)),    # w2 slab (streamed)
                pl.BlockSpec((1, Hp), lambda i, k: (0, 0)),     # b2 (resident)
            ],
            out_specs=pl.BlockSpec((tm, Hp), lambda i, k: (i, 0)),
            scratch_shapes=[pltpu.VMEM((tm, Hp), jnp.float32)],
        ),
        compiler_params=pltpu.CompilerParams(
            dimension_semantics=("parallel", "arbitrary"),
            vmem_limit_bytes=params["vmem_limit_bytes"],
        ),
        cost_estimate=cost,
    )(x2, params["w1"], params["b1"], params["w2"], params["b2"])

    if Hp != H:
        out = out[:, :H]
    return out.reshape(B, S, H)


def feed_forward(x, w1, b1, w2, b2, *, compute_dtype=jnp.bfloat16, **kw):
    """Convenience path: prepare (pad/cast) + run in one call."""
    params = prepare_ffn_params(w1, b1, w2, b2, compute_dtype=compute_dtype, **kw)
    return feed_forward_prepared(x, params)


if __name__ == "__main__":
    # Small shapes consistent with the module: hidden_size=32, d_ff=64,
    # input x of shape (batch=2, seq=8, hidden=32).
    B, S, H, Dff = 2, 8, 32, 64

    key = jax.random.PRNGKey(0)
    kx, kw1, kb1, kw2, kb2 = jax.random.split(key, 5)

    x = jax.random.normal(kx, (B, S, H), dtype=jnp.float32)

    # Deterministic parameter init (mimics nn.Linear's uniform(-1/sqrt(fan_in), ...)).
    lim1 = 1.0 / (H ** 0.5)
    lim2 = 1.0 / (Dff ** 0.5)
    w1 = jax.random.uniform(kw1, (H, Dff), jnp.float32, -lim1, lim1)
    b1 = jax.random.uniform(kb1, (1, Dff), jnp.float32, -lim1, lim1)
    w2 = jax.random.uniform(kw2, (Dff, H), jnp.float32, -lim2, lim2)
    b2 = jax.random.uniform(kb2, (1, H), jnp.float32, -lim2, lim2)

    # Pure-JAX reference (dropout = identity in eval mode).
    ref = (jnp.maximum(x.reshape(-1, H) @ w1 + b1, 0.0) @ w2 + b2).reshape(B, S, H)

    # 1) f32 compute path (tight tolerance check).
    params_f32 = prepare_ffn_params(w1, b1, w2, b2, compute_dtype=jnp.float32)
    y_f32 = jax.block_until_ready(feed_forward_prepared(x, params_f32))
    assert jnp.allclose(y_f32, ref, atol=1e-5, rtol=1e-5), "f32 mismatch vs reference"

    # 2) default bf16 compute path (looser tolerance: bf16 operands, f32 accum).
    y_bf16 = jax.block_until_ready(feed_forward(x, w1, b1, w2, b2))
    assert jnp.allclose(y_bf16, ref, atol=5e-2, rtol=5e-2), "bf16 mismatch vs reference"

    print("KERNEL_OK")
</pallas_src>

<mosaic_0001>
module attributes {stable_mosaic.version = 11 : i64} {
  func.func @_ffn_kernel(%arg0: i32, %arg1: i32, %arg2: memref<16x128xf32, #tpu.memory_space<vmem>>, %arg3: memref<128x128xf32, #tpu.memory_space<vmem>>, %arg4: memref<1x128xf32, #tpu.memory_space<vmem>>, %arg5: memref<128x128xf32, #tpu.memory_space<vmem>>, %arg6: memref<1x128xf32, #tpu.memory_space<vmem>>, %arg7: memref<16x128xf32, #tpu.memory_space<vmem>>, %arg8: memref<16x128xf32, #tpu.memory_space<vmem>>) attributes {dimension_semantics = [#tpu.dimension_semantics<parallel>, #tpu.dimension_semantics<arbitrary>], iteration_bounds = array<i64: 1, 1>, scalar_prefetch = 0 : i64, scratch_operands = 1 : i64, tpu.core_type = #tpu.core_type<tc>, window_params = [{transform_indices = @transform_0, window_bounds = array<i64: 16, 128>}, {transform_indices = @transform_1, window_bounds = array<i64: 128, 128>}, {pipeline_mode = #tpu.pipeline_mode<synchronous>, transform_indices = @transform_2, window_bounds = array<i64: 1, 128>}, {transform_indices = @transform_3, window_bounds = array<i64: 128, 128>}, {pipeline_mode = #tpu.pipeline_mode<synchronous>, transform_indices = @transform_4, window_bounds = array<i64: 1, 128>}, {transform_indices = @transform_5, window_bounds = array<i64: 16, 128>}]} {
    %c0 = arith.constant 0 : index
    %c0_0 = arith.constant 0 : index
    %0 = vector.load %arg2[%c0, %c0_0] : memref<16x128xf32, #tpu.memory_space<vmem>>, vector<16x128xf32>
    %c0_1 = arith.constant 0 : index
    %c0_2 = arith.constant 0 : index
    %1 = vector.load %arg3[%c0_1, %c0_2] : memref<128x128xf32, #tpu.memory_space<vmem>>, vector<128x128xf32>
    %cst = arith.constant dense<0.000000e+00> : vector<16x128xf32>
    %2 = tpu.matmul %0, %1, %cst {dimension_numbers = #tpu.dot_dimension_numbers<[1], [0], [0], [1], [0, 0, 1, 1], [], []>} : vector<16x128xf32>, vector<128x128xf32>, vector<16x128xf32> -> vector<16x128xf32>
    %3 = arith.index_cast %arg1 : i32 to index
    %c0_3 = arith.constant 0 : index
    %4 = vector.load %arg4[%3, %c0_3] : memref<1x128xf32, #tpu.memory_space<vmem>>, vector<1x128xf32>
    %5 = vector.broadcast %4 : vector<1x128xf32> to vector<16x128xf32>
    %6 = arith.addf %2, %5 : vector<16x128xf32>
    %cst_4 = arith.constant 0.000000e+00 : f32
    %7 = vector.broadcast %cst_4 : f32 to vector<16x128xf32>
    %8 = arith.maximumf %6, %7 : vector<16x128xf32>
    %c0_5 = arith.constant 0 : index
    %c0_6 = arith.constant 0 : index
    %9 = vector.load %arg5[%c0_5, %c0_6] : memref<128x128xf32, #tpu.memory_space<vmem>>, vector<128x128xf32>
    %cst_7 = arith.constant dense<0.000000e+00> : vector<16x128xf32>
    %10 = tpu.matmul %8, %9, %cst_7 {dimension_numbers = #tpu.dot_dimension_numbers<[1], [0], [0], [1], [0, 0, 1, 1], [], []>} : vector<16x128xf32>, vector<128x128xf32>, vector<16x128xf32> -> vector<16x128xf32>
    %c0_i32 = arith.constant 0 : i32
    %11 = arith.cmpi eq, %arg1, %c0_i32 : i32
    %12 = arith.extui %11 : i1 to i32
    %c0_i32_8 = arith.constant 0 : i32
    %13 = arith.cmpi ne, %12, %c0_i32_8 : i32
    scf.if %13 {
      %c0_13 = arith.constant 0 : index
      %c0_14 = arith.constant 0 : index
      %20 = vector.load %arg8[%c0_13, %c0_14] : memref<16x128xf32, #tpu.memory_space<vmem>>, vector<16x128xf32>
      tpu.vector_store %arg8[%c0_13, %c0_14], %10 {strides = array<i32>} : memref<16x128xf32, #tpu.memory_space<vmem>>, vector<16x128xf32>,
    } else {
    }
    %c0_i32_9 = arith.constant 0 : i32
    %14 = arith.cmpi sgt, %arg1, %c0_i32_9 : i32
    %15 = arith.extui %14 : i1 to i32
    %c0_i32_10 = arith.constant 0 : i32
    %16 = arith.cmpi ne, %15, %c0_i32_10 : i32
    scf.if %16 {
      %c0_13 = arith.constant 0 : index
      %c0_14 = arith.constant 0 : index
      %20 = vector.load %arg8[%c0_13, %c0_14] : memref<16x128xf32, #tpu.memory_space<vmem>>, vector<16x128xf32>
      %21 = arith.addf %20, %10 : vector<16x128xf32>
      %c0_15 = arith.constant 0 : index
      %c0_16 = arith.constant 0 : index
      %22 = vector.load %arg8[%c0_15, %c0_16] : memref<16x128xf32, #tpu.memory_space<vmem>>, vector<16x128xf32>
      tpu.vector_store %arg8[%c0_15, %c0_16], %21 {strides = array<i32>} : memref<16x128xf32, #tpu.memory_space<vmem>>, vector<16x128xf32>,
    } else {
    }
    %c0_i32_11 = arith.constant 0 : i32
    %17 = arith.cmpi eq, %arg1, %c0_i32_11 : i32
    %18 = arith.extui %17 : i1 to i32
    %c0_i32_12 = arith.constant 0 : i32
    %19 = arith.cmpi ne, %18, %c0_i32_12 : i32
    scf.if %19 {
      %c0_13 = arith.constant 0 : index
      %c0_14 = arith.constant 0 : index
      %20 = vector.load %arg8[%c0_13, %c0_14] : memref<16x128xf32, #tpu.memory_space<vmem>>, vector<16x128xf32>
      %c0_15 = arith.constant 0 : index
      %c0_16 = arith.constant 0 : index
      %21 = vector.load %arg6[%c0_15, %c0_16] : memref<1x128xf32, #tpu.memory_space<vmem>>, vector<1x128xf32>
      %22 = vector.broadcast %21 : vector<1x128xf32> to vector<16x128xf32>
      %23 = arith.addf %20, %22 : vector<16x128xf32>
      %c0_17 = arith.constant 0 : index
      %c0_18 = arith.constant 0 : index
      %24 = vector.load %arg7[%c0_17, %c0_18] : memref<16x128xf32, #tpu.memory_space<vmem>>, vector<16x128xf32>
      tpu.vector_store %arg7[%c0_17, %c0_18], %23 {strides = array<i32>} : memref<16x128xf32, #tpu.memory_space<vmem>>, vector<16x128xf32>,
    } else {
    }
    return
  }
  func.func @transform_0(%arg0: i32, %arg1: i32) -> (i32, i32) {
    %c0_i32 = arith.constant 0 : i32
    %c0_i32_0 = arith.constant 0 : i32
    return %arg0, %c0_i32 : i32, i32
  }
  func.func @transform_1(%arg0: i32, %arg1: i32) -> (i32, i32) {
    %c0_i32 = arith.constant 0 : i32
    %c0_i32_0 = arith.constant 0 : i32
    return %c0_i32, %arg1 : i32, i32
  }
  func.func @transform_2(%arg0: i32, %arg1: i32) -> (i32, i32) {
    %c0_i32 = arith.constant 0 : i32
    %c0_i32_0 = arith.constant 0 : i32
    %c0_i32_1 = arith.constant 0 : i32
    return %c0_i32, %c0_i32_0 : i32, i32
  }
  func.func @transform_3(%arg0: i32, %arg1: i32) -> (i32, i32) {
    %c0_i32 = arith.constant 0 : i32
    %c0_i32_0 = arith.constant 0 : i32
    return %arg1, %c0_i32 : i32, i32
  }
  func.func @transform_4(%arg0: i32, %arg1: i32) -> (i32, i32) {
    %c0_i32 = arith.constant 0 : i32
    %c0_i32_0 = arith.constant 0 : i32
    %c0_i32_1 = arith.constant 0 : i32
    return %c0_i32, %c0_i32_0 : i32, i32
  }
  func.func @transform_5(%arg0: i32, %arg1: i32) -> (i32, i32) {
    %c0_i32 = arith.constant 0 : i32
    %c0_i32_0 = arith.constant 0 : i32
    return %arg0, %c0_i32 : i32, i32
  }
}

</mosaic_0001>

<bundles_post_ra>
// kernel: tpu_custom_call.1
= control target key start
LH: loop header
LB: loop body
LE: loop exit
PB: predicated region body
PF: predicated region fallthrough
CT: control target
= control target key end

     0   :  { %10 = vsyncpa [#allocation4], 0  ;;  %s686_s0 = inlined_call_operand.hbm [shape: f32[16,128], index: 0, kind: input, shape index: {}]   ;;  %s687_s1 = inlined_call_operand.hbm [shape: f32[128,128], index: 1, kind: input, shape index: {}]   ;;  %s688_s2 = inlined_call_operand.vmem [shape: f32[1,128], index: 2, kind: input, shape index: {}]   ;;  %s689_s3 = inlined_call_operand.hbm [shape: f32[128,128], index: 3, kind: input, shape index: {}]   ;;  %s690_s4 = inlined_call_operand.vmem [shape: f32[1,128], index: 4, kind: input, shape index: {}]   ;;  %s691_s5 = inlined_call_operand.hbm [shape: f32[16,128], index: 5, kind: output, shape index: {}]  }
   0x1   :  { %11 = vsyncpa [#allocation7], 0 }
   0x2   :  { %12 = vsyncpa [#allocation5], 0  ;;  %s577_s18 = smov [#allocation6]   ;;  %s578_s20 = smov [#allocation3]  }
   0x3   :  { %s30_s19 = sshll.u32 %s577_s18, 4  ;;  %s18_s21 = sshll.u32 %s578_s20, 4  ;;  %s31_s19 = int_to_ptr.vmem [resolvable:$true] %s30_s19  ;;  %s613_s21 = int_to_ptr.vmem [resolvable:$true] %s18_s21 }
   0x4   :  { %s483_s24 = scalar_lea.hbm %s687_s1, 2048 }
   0x5   :  { %p484_p0 = scmp.ne.s32.totalorder %s687_s1, %s483_s24  ;;  %p487_p1 = scmp.lt.u32.totalorder %s483_s24, %s687_s1 }
   0x7   :  { %p489_p2 = pnand %p487_p1, %p484_p0 }
   0x9   :  { %492 = shalt.err (!%p489_p2)
}
   0xa   :  { %s493_s29 = scalar_lea.vmem %s31_s19, 2048  ;;  %p498_p4 = scmp.lt.s32.totalorder %s31_s19, %s31_s19 }
   0xb   :  { %p494_p3 = scmp.ne.s32.totalorder %s31_s19, %s493_s29  ;;  %p499_p5 = scmp.lt.s32.totalorder %s493_s29, %s493_s29 }
   0xd   :  { %p500_p6 = por %p499_p5, %p498_p4 }
   0xf   :  { %p501_p7 = pnand %p500_p6, %p494_p3 }
  0x11   :  { %504 = shalt.err (!%p501_p7)
}
  0x12   :  { %s579_s30 = smov 128   ;;  %s580_s6 = smov 8  }
  0x13   :  { %36 = dma.hbm_to_vmem [thread:$0]  %s687_s1, 2048, %s31_s19, [#allocation7], %s579_s30, %s579_s30, %s580_s6  }
  0x14   :  { %s505_s11 = scalar_lea.hbm %s686_s0, 256 }
  0x15   :  { %p506_p8 = scmp.ne.s32.totalorder %s686_s0, %s505_s11  ;;  %p509_p9 = scmp.lt.u32.totalorder %s505_s11, %s686_s0 }
  0x17   :  { %p511_p10 = pnand %p509_p9, %p506_p8 }
  0x19   :  { %514 = shalt.err (!%p511_p10)
}
  0x1a   :  { %s515_s16 = scalar_lea.vmem %s613_s21, 256  ;;  %p520_p12 = scmp.lt.s32.totalorder %s613_s21, %s613_s21 }
  0x1b   :  { %p516_p11 = scmp.ne.s32.totalorder %s613_s21, %s515_s16  ;;  %p521_p13 = scmp.lt.s32.totalorder %s515_s16, %s515_s16 }
  0x1d   :  { %p522_p0 = por %p521_p13, %p520_p12 }
  0x1f   :  { %p523_p1 = pnand %p522_p0, %p516_p11 }
  0x21   :  { %526 = shalt.err (!%p523_p1)
}
  0x22   :  { %24 = dma.hbm_to_vmem [thread:$0]  %s686_s0, 256, %s613_s21, [#allocation4], %s579_s30, %s579_s30, %s580_s6  }
  0x23   :  { %s581_s18 = smov [#allocation8]   ;;  %s527_s23 = scalar_lea.hbm %s689_s3, 2048 }
  0x24   :  { %s44_s19 = sshll.u32 %s581_s18, 4  ;;  %p528_p2 = scmp.ne.s32.totalorder %s689_s3, %s527_s23  ;;  %s45_s19 = int_to_ptr.vmem [resolvable:$true] %s44_s19 }
  0x25   :  { %p531_p3 = scmp.lt.u32.totalorder %s527_s23, %s689_s3 }
  0x27   :  { %p533_p4 = pnand %p531_p3, %p528_p2 }
  0x29   :  { %536 = shalt.err (!%p533_p4)
}
  0x2a   :  { %s537_s28 = scalar_lea.vmem %s45_s19, 2048  ;;  %p542_p6 = scmp.lt.s32.totalorder %s45_s19, %s45_s19 }
  0x2b   :  { %p538_p5 = scmp.ne.s32.totalorder %s45_s19, %s537_s28  ;;  %p543_p7 = scmp.lt.s32.totalorder %s537_s28, %s537_s28 }
  0x2d   :  { %p544_p8 = por %p543_p7, %p542_p6 }
  0x2f   :  { %p545_p9 = pnand %p544_p8, %p538_p5 }
  0x31   :  { %548 = shalt.err (!%p545_p9)
}
  0x32   :  { %50 = dma.hbm_to_vmem [thread:$0]  %s689_s3, 2048, %s45_s19, [#allocation7], %s579_s30, %s579_s30, %s580_s6  }
  0x33   :  { %571 = dma.done.wait [#allocation4], 256  }
  0x34   :  { %572 = vsyncadd [#allocation4], 4294967040 }
  0x35   :  { %573 = dma.done.wait [#allocation7], 4096  }
  0x36   :  { %574 = vsyncadd [#allocation7], 4294963200  ;;  %v64_v0 = vld [vmem:[#allocation6] sm:$0xff]  ;;  %v65_v1 = vld [vmem:[#allocation6 + $0x8] sm:$0xff]  ;;  %s582_s9 = smov [#allocation9]  }
  0x37   :  { %v66_v2 = vld [vmem:[#allocation6 + $0x10] sm:$0xff]  ;;  %v413_v3 = vpack.c.bf16 %v65_v1, %v64_v0  ;;  %v67_v4 = vld [vmem:[#allocation6 + $0x18] sm:$0xff]  ;;  %v68_v6 = vld [vmem:[#allocation6 + $0x20] sm:$0xff]  ;;  %s292_s10 = sshll.u32 %s582_s9, 4  ;;  %s293_s10 = int_to_ptr.vmem [resolvable:$true] %s292_s10 }
  0x38   :  { %v417_v5 = vpack.c.bf16 %v67_v4, %v66_v2  ;;  %v69_v7 = vld [vmem:[#allocation6 + $0x28] sm:$0xff]  ;;  %v70_v9 = vld [vmem:[#allocation6 + $0x30] sm:$0xff]  ;;  %v71_v10 = vld [vmem:[#allocation6 + $0x38] sm:$0xff]  ;;  %p554_p11 = scmp.lt.s32.totalorder %s293_s10, %s293_s10 }
  0x39   :  { %414 = vmatprep.subr.bf16.mxu0 %v413_v3  ;;  %v421_v8 = vpack.c.bf16 %v69_v7, %v68_v6  ;;  %v62_v11 = vld [vmem:[#allocation3] sm:$0xff]  ;;  %v164_v12 = vld [vmem:[#allocation8] sm:$0xff]  ;;  %v165_v13 = vld [vmem:[#allocation8 + $0x8] sm:$0xff]  ;;  %v425_v20 = vpack.c.bf16 %v71_v10, %v70_v9 }
  0x3a   :  { %416 = vmatpush3.bf16.msra.mxu0 %v413_v3  ;;  %375 = vmatprep.mubr.f32.mxu0 %v62_v11  ;;  %v166_v14 = vld [vmem:[#allocation8 + $0x10] sm:$0xff]  ;;  %v445_v15 = vpack.c.bf16 %v165_v13, %v164_v12  ;;  %v167_v16 = vld [vmem:[#allocation8 + $0x18] sm:$0xff]  ;;  %v168_v18 = vld [vmem:[#allocation8 + $0x20] sm:$0xff] }
  0x3b   :  { %418 = vmatprep.subr.bf16.mxu0 %v417_v5  ;;  %v449_v17 = vpack.c.bf16 %v167_v16, %v166_v14  ;;  %v169_v19 = vld [vmem:[#allocation8 + $0x28] sm:$0xff]  ;;  %v72_v21 = vld [vmem:[#allocation6 + $0x40] sm:$0xff]  ;;  %v170_v24 = vld [vmem:[#allocation8 + $0x30] sm:$0xff] }
  0x3c   :  { %446 = vmatprep.subr.bf16.mxu1 %v445_v15  ;;  %v73_v22 = vld [vmem:[#allocation6 + $0x48] sm:$0xff]  ;;  %v453_v23 = vpack.c.bf16 %v169_v19, %v168_v18  ;;  %v171_v25 = vld [vmem:[#allocation8 + $0x38] sm:$0xff]  ;;  %v74_v27 = vld [vmem:[#allocation6 + $0x50] sm:$0xff] }
  0x3d   :  { %448 = vmatpush3.bf16.msra.mxu1 %v445_v15  ;;  %v429_v26 = vpack.c.bf16 %v73_v22, %v72_v21  ;;  %v75_v28 = vld [vmem:[#allocation6 + $0x58] sm:$0xff]  ;;  %v457_v29 = vpack.c.bf16 %v171_v25, %v170_v24  ;;  %v172_v30 = vld [vmem:[#allocation8 + $0x40] sm:$0xff]  ;;  %v173_v31 = vld [vmem:[#allocation8 + $0x48] sm:$0xff] }
  0x3e   :  { %420 = vmatpush3.bf16.msra.mxu0 %v417_v5  ;;  %450 = vmatprep.subr.bf16.mxu1 %v449_v17  ;;  %v433_v32 = vpack.c.bf16 %v75_v28, %v74_v27  ;;  %v76_v33 = vld [vmem:[#allocation6 + $0x60] sm:$0xff]  ;;  %v77_v34 = vld [vmem:[#allocation6 + $0x68] sm:$0xff]  ;;  %v461_v35 = vpack.c.bf16 %v173_v31, %v172_v30  ;;  %v174_v36 = vld [vmem:[#allocation8 + $0x50] sm:$0xff] }
  0x3f   :  { %422 = vmatprep.subr.bf16.mxu0 %v421_v8  ;;  %v175_v37 = vld [vmem:[#allocation8 + $0x58] sm:$0xff]  ;;  %v437_v38 = vpack.c.bf16 %v77_v34, %v76_v33  ;;  %v78_v39 = vld [vmem:[#allocation6 + $0x70] sm:$0xff]  ;;  %v176_v42 = vld [vmem:[#allocation8 + $0x60] sm:$0xff] }
  0x40   :  { %v79_v40 = vld [vmem:[#allocation6 + $0x78] sm:$0xff]  ;;  %v465_v41 = vpack.c.bf16 %v175_v37, %v174_v36  ;;  %v177_v43 = vld [vmem:[#allocation8 + $0x68] sm:$0xff]  ;;  %v178_v47 = vld [vmem:[#allocation8 + $0x70] sm:$0xff] }
  0x41   :  { %452 = vmatpush3.bf16.msra.mxu1 %v449_v17  ;;  %v441_v44 = vpack.c.bf16 %v79_v40, %v78_v39  ;;  %v469_v45 = vpack.c.bf16 %v177_v43, %v176_v42  ;;  %v63_v46 = vld [vmem:[#allocation3 + $0x8] sm:$0xff]  ;;  %v305_v50 = vld [vmem:[%s688_s2] ss:$0 sm:$0xff]  ;;  %s549_s2 = scalar_lea.vmem %s293_s10, 256 }
  0x42   :  { %424 = vmatpush3.bf16.msra.mxu0 %v421_v8  ;;  %454 = vmatprep.subr.bf16.mxu1 %v453_v23  ;;  %v179_v48 = vld [vmem:[#allocation8 + $0x78] sm:$0xff]  ;;  %v306_v57 = vld [vmem:[%s690_s4] ss:$0 sm:$0xff]  ;;  %p550_p10 = scmp.ne.s32.totalorder %s293_s10, %s549_s2  ;;  %p555_p12 = scmp.lt.s32.totalorder %s549_s2, %s549_s2 }
  0x43   :  { %426 = vmatprep.subr.bf16.mxu0 %v425_v20  ;;  %v473_v49 = vpack.c.bf16 %v179_v48, %v178_v47 }
  0x44   :  { %p556_p13 = por %p555_p12, %p554_p11 }
  0x45   :  { %456 = vmatpush3.bf16.msra.mxu1 %v453_v23 }
  0x46   :  { %428 = vmatpush3.bf16.msra.mxu0 %v425_v20  ;;  %458 = vmatprep.subr.bf16.mxu1 %v457_v29  ;;  %p557_p0 = pnand %p556_p13, %p550_p10 }
  0x47   :  { %430 = vmatprep.subr.bf16.mxu0 %v429_v26 }
  0x49   :  { %460 = vmatpush3.bf16.msra.mxu1 %v457_v29 }
  0x4a   :  { %432 = vmatpush3.bf16.msra.mxu0 %v429_v26  ;;  %462 = vmatprep.subr.bf16.mxu1 %v461_v35 }
  0x4b   :  { %434 = vmatprep.subr.bf16.mxu0 %v433_v32 }
  0x4d   :  { %464 = vmatpush3.bf16.msra.mxu1 %v461_v35 }
  0x4e   :  { %436 = vmatpush3.bf16.msra.mxu0 %v433_v32  ;;  %466 = vmatprep.subr.bf16.mxu1 %v465_v41 }
  0x4f   :  { %438 = vmatprep.subr.bf16.mxu0 %v437_v38 }
  0x51   :  { %468 = vmatpush3.bf16.msra.mxu1 %v465_v41 }
  0x52   :  { %440 = vmatpush3.bf16.msra.mxu0 %v437_v38  ;;  %470 = vmatprep.subr.bf16.mxu1 %v469_v45 }
  0x53   :  { %442 = vmatprep.subr.bf16.mxu0 %v441_v44 }
  0x55   :  { %472 = vmatpush3.bf16.msra.mxu1 %v469_v45 }
  0x56   :  { %444 = vmatpush3.bf16.msra.mxu0 %v441_v44  ;;  %474 = vmatprep.subr.bf16.mxu1 %v473_v49 }
  0x59   :  { %376 = vmatmul.mubr.f32.vlgmr.msra.gmra.mrb[0].mxu0 %v63_v46  ;;  %476 = vmatpush3.bf16.msra.mxu1 %v473_v49 }
 0x12c   :  { %v377_v51 = vpop.f32.mrb[0].mxu0 }
 0x12d   :  { %v159_v52 = vadd.f32 %v377_v51, %v305_v50  ;;  %v153_v53 = vpop.f32.mrb[1].mxu0 }
 0x12e   :  { %v154_v54 = vadd.f32 %v305_v50, %v153_v53 }
 0x12f   :  { %v163_v56 = vmax.f32 %v159_v52, 0.0 }
 0x130   :  { %v162_v55 = vmax.f32 %v154_v54, 0.0 }
 0x132   :  { %410 = vmatprep.mubr.f32.mxu1 %v162_v55 }
 0x133   :  { %411 = vmatmul.mubr.f32.vlgmr.msra.gmra.mrb[0].mxu1 %v163_v56 }
 0x206   :  { %v412_v58 = vpop.f32.mrb[0].mxu1 }
 0x207   :  { %v284_v59 = vadd.f32 %v412_v58, %v306_v57  ;;  %v246_v60 = vpop.f32.mrb[1].mxu1 }
 0x208   :  { %v283_v61 = vadd.f32 %v306_v57, %v246_v60 }
 0x209   :  { %286 = vst [vmem:[#allocation9 + $0x8] sm:$0xff] %v284_v59 }
 0x20a   :  { %285 = vst [vmem:[#allocation9] sm:$0xff] %v283_v61 }
 0x20b   :  { %560 = shalt.err (!%p557_p0)
}
 0x20c   :  { %s561_s4 = scalar_lea.hbm %s691_s5, 256 }
 0x20d   :  { %p562_p1 = scmp.ne.s32.totalorder %s691_s5, %s561_s4  ;;  %p565_p2 = scmp.lt.u32.totalorder %s561_s4, %s691_s5 }
 0x20f   :  { %p567_p3 = pnand %p565_p2, %p562_p1 }
 0x211   :  { %570 = shalt.err (!%p567_p3)
}
 0x212   :  { %298 = dma.vmem_to_hbm [thread:$0]  %s293_s10, 256, %s691_s5, [#allocation5], %s579_s30, %s579_s30, %s580_s6  }
 0x213   :  { %575 = dma.done.wait [#allocation5], 256  }
 0x214   :  { %576 = vsyncadd [#allocation5], 4294967040 }
 0x215   :  { %302 = vsyncpa [#allocation4], 1 }
 0x216   :  { %303 = vsyncpa [#allocation7], 1 }
 0x217   :  { %304 = vsyncpa [#allocation5], 1 }

</bundles_post_ra>
